<compile_context>
chip_gen: v7x
topology: tpu7x:2x2x1
jax: 0.10.0
libtpu: 0.0.40
codegen_flags: <defaults>
</compile_context>

<pallas_src>
import jax
import jax.numpy as jnp
from jax.experimental import pallas as pl
from jax.experimental.pallas import tpu as pltpu

D_IN, D1, D2, D_OUT = 1000, 256, 64, 2     # fc1: 1000->256, fc2: 256->64, fc3: 64->2
D_OUT_PAD = 128                            # lane-dense fc3 output width
BN_EPS = 1e-5


def _round_up(x, m):
    return ((x + m - 1) // m) * m


def prefetch_head_kernel(x_ref,          # (TB, 1000) bf16 feature tile
                         w1_ref,         # (1000, 256) bf16
                         vec1_ref,       # (3, 256) f32: [bias; bn_scale; bn_shift]
                         w2_ref,         # (256, 64) bf16
                         vec2_ref,       # (3, 64) f32: [bias; bn_scale; bn_shift]
                         w3_ref,         # (64, 128) f32 (cols 2: padded with zeros)
                         b3_ref,         # (1, 128) f32 (cols 2: padded with zeros)
                         o_ref):         # (TB, 128) f32
    # fc1 (bf16 MXU, f32 accumulate) + bias + sigmoid
    h = jnp.dot(x_ref[...], w1_ref[...], preferred_element_type=jnp.float32)
    h = jax.nn.sigmoid(h + vec1_ref[0:1, :])
    # dropout1: eval-mode identity; batchnorm1 folded into scale/shift
    h = h * vec1_ref[1:2, :] + vec1_ref[2:3, :]

    # fc2 (bf16 MXU, f32 accumulate) + bias + sigmoid
    h = jnp.dot(h.astype(jnp.bfloat16), w2_ref[...],
                preferred_element_type=jnp.float32)
    h = jax.nn.sigmoid(h + vec2_ref[0:1, :])
    # dropout2: eval-mode identity; batchnorm2 folded into scale/shift
    h = h * vec2_ref[1:2, :] + vec2_ref[2:3, :]

    # fc3 (lane-dense padded to 128 cols) + relu + sigmoid
    h = jnp.dot(h, w3_ref[...], preferred_element_type=jnp.float32) + b3_ref[...]
    o_ref[...] = jax.nn.sigmoid(jnp.maximum(h, 0.0))


def prefetch_head(feats, params, *, block_batch=512):
    """feats: [B, 1000] float32 (output of the frozen vgg19_bn baseline)."""
    (w1, b1, g1, beta1, rm1, rv1,
     w2, b2, g2, beta2, rm2, rv2,
     w3, b3) = params
    B = feats.shape[0]

    # ---- fold eval-mode BatchNorm (frozen running stats) into scale/shift ----
    s1 = g1 * jax.lax.rsqrt(rv1 + BN_EPS)
    t1 = beta1 - rm1 * s1
    s2 = g2 * jax.lax.rsqrt(rv2 + BN_EPS)
    t2 = beta2 - rm2 * s2
    vec1 = jnp.concatenate([b1, s1, t1], axis=0).astype(jnp.float32)   # [3, D1]
    vec2 = jnp.concatenate([b2, s2, t2], axis=0).astype(jnp.float32)   # [3, D2]

    # ---- lane-dense output: pad fc3 from 2 -> 128 columns ----
    w3p = jnp.zeros((D2, D_OUT_PAD), jnp.float32).at[:, :D_OUT].set(w3)
    b3p = jnp.zeros((1, D_OUT_PAD), jnp.float32).at[:, :D_OUT].set(b3)

    # ---- bf16 MXU operands (cast once, in the wrapper) ----
    w1_bf = w1.astype(jnp.bfloat16)
    w2_bf = w2.astype(jnp.bfloat16)
    feats_bf = feats.astype(jnp.bfloat16)

    # ---- batch tiling: TB multiple of 8, pad the last tile with zero rows ----
    TB = min(block_batch, _round_up(B, 8))
    B_pad = _round_up(B, TB)
    if B_pad != B:
        feats_bf = jnp.pad(feats_bf, ((0, B_pad - B), (0, 0)))

    # VMEM footprint at TB=512: 2x(512x1000x2B) feats + 2x(512x128x4B) out
    # + ~0.6 MB resident weights  ->  well inside the 32 MiB default scoped
    # limit on v5e/v6e/v7x, so no vmem_limit_bytes override is needed.
    out = pl.pallas_call(
        prefetch_head_kernel,
        out_shape=jax.ShapeDtypeStruct((B_pad, D_OUT_PAD), jnp.float32),
        grid=(B_pad // TB,),
        in_specs=[
            pl.BlockSpec((TB, D_IN), lambda i: (i, 0)),        # feats: streamed
            pl.BlockSpec((D_IN, D1), lambda i: (0, 0)),        # w1: resident
            pl.BlockSpec((3, D1), lambda i: (0, 0)),           # bias/scale/shift 1
            pl.BlockSpec((D1, D2), lambda i: (0, 0)),          # w2: resident
            pl.BlockSpec((3, D2), lambda i: (0, 0)),           # bias/scale/shift 2
            pl.BlockSpec((D2, D_OUT_PAD), lambda i: (0, 0)),   # w3 (padded)
            pl.BlockSpec((1, D_OUT_PAD), lambda i: (0, 0)),    # b3 (padded)
        ],
        out_specs=pl.BlockSpec((TB, D_OUT_PAD), lambda i: (i, 0)),
        compiler_params=pltpu.CompilerParams(
            dimension_semantics=("parallel",)),
    )(feats_bf, w1_bf, vec1, w2_bf, vec2, w3p, b3p)

    return out[:B, :D_OUT]


def _linear_init(key, fan_in, fan_out):
    """PyTorch nn.Linear default init: U(-1/sqrt(fan_in), 1/sqrt(fan_in))."""
    kw, kb = jax.random.split(key)
    bound = 1.0 / jnp.sqrt(float(fan_in))
    w = jax.random.uniform(kw, (fan_in, fan_out), jnp.float32, -bound, bound)
    b = jax.random.uniform(kb, (1, fan_out), jnp.float32, -bound, bound)
    return w, b


def _bn_init(dim):
    """PyTorch BatchNorm1d defaults: weight=1, bias=0, running_mean=0, running_var=1."""
    gamma = jnp.ones((1, dim), jnp.float32)
    beta = jnp.zeros((1, dim), jnp.float32)
    run_mean = jnp.zeros((1, dim), jnp.float32)
    run_var = jnp.ones((1, dim), jnp.float32)
    return gamma, beta, run_mean, run_var


def init_params(key):
    k1, k2, k3 = jax.random.split(key, 3)
    w1, b1 = _linear_init(k1, D_IN, D1)
    g1, beta1, rm1, rv1 = _bn_init(D1)
    w2, b2 = _linear_init(k2, D1, D2)
    g2, beta2, rm2, rv2 = _bn_init(D2)
    w3, b3 = _linear_init(k3, D2, D_OUT)
    return [w1, b1, g1, beta1, rm1, rv1,
            w2, b2, g2, beta2, rm2, rv2,
            w3, b3]


def reference_head(feats, params):
    """Pure-JAX f32 reference of the eval-mode PyTorch head."""
    (w1, b1, g1, beta1, rm1, rv1,
     w2, b2, g2, beta2, rm2, rv2,
     w3, b3) = params
    h = jax.nn.sigmoid(feats @ w1 + b1)
    h = (h - rm1) / jnp.sqrt(rv1 + BN_EPS) * g1 + beta1
    h = jax.nn.sigmoid(h @ w2 + b2)
    h = (h - rm2) / jnp.sqrt(rv2 + BN_EPS) * g2 + beta2
    h = jnp.maximum(h @ w3 + b3, 0.0)
    return jax.nn.sigmoid(h)


if __name__ == "__main__":
    key = jax.random.PRNGKey(0)
    k_feat, k_params = jax.random.split(key)

    B = 8
    # Features standing in for the frozen vgg19_bn(x) 1000-class output.
    feats = jax.random.normal(k_feat, (B, D_IN), jnp.float32)
    params = init_params(k_params)

    out = prefetch_head(feats, params)
    out = jax.block_until_ready(out)

    ref = reference_head(feats, params)
    assert out.shape == (B, D_OUT)
    # bf16 matmul operands introduce ~1e-3-level quantization error vs the f32
    # reference; 2e-2 is a comfortably safe bound for sigmoid outputs in [0,1].
    assert jnp.allclose(out, ref, atol=2e-2, rtol=2e-2)
    print("KERNEL_OK")
</pallas_src>

<mosaic_0001>
module attributes {stable_mosaic.version = 11 : i64} {
  func.func @prefetch_head_kernel(%arg0: i32, %arg1: memref<8x1000xbf16, #tpu.memory_space<vmem>>, %arg2: memref<1000x256xbf16, #tpu.memory_space<vmem>>, %arg3: memref<3x256xf32, #tpu.memory_space<vmem>>, %arg4: memref<256x64xbf16, #tpu.memory_space<vmem>>, %arg5: memref<3x64xf32, #tpu.memory_space<vmem>>, %arg6: memref<64x128xf32, #tpu.memory_space<vmem>>, %arg7: memref<1x128xf32, #tpu.memory_space<vmem>>, %arg8: memref<8x128xf32, #tpu.memory_space<vmem>>) attributes {dimension_semantics = [#tpu.dimension_semantics<parallel>], iteration_bounds = array<i64: 1>, scalar_prefetch = 0 : i64, scratch_operands = 0 : i64, tpu.core_type = #tpu.core_type<tc>, window_params = [{transform_indices = @transform_0, window_bounds = array<i64: 8, 1000>}, {pipeline_mode = #tpu.pipeline_mode<synchronous>, transform_indices = @transform_1, window_bounds = array<i64: 1000, 256>}, {pipeline_mode = #tpu.pipeline_mode<synchronous>, transform_indices = @transform_2, window_bounds = array<i64: 3, 256>}, {pipeline_mode = #tpu.pipeline_mode<synchronous>, transform_indices = @transform_3, window_bounds = array<i64: 256, 64>}, {pipeline_mode = #tpu.pipeline_mode<synchronous>, transform_indices = @transform_4, window_bounds = array<i64: 3, 64>}, {pipeline_mode = #tpu.pipeline_mode<synchronous>, transform_indices = @transform_5, window_bounds = array<i64: 64, 128>}, {pipeline_mode = #tpu.pipeline_mode<synchronous>, transform_indices = @transform_6, window_bounds = array<i64: 1, 128>}, {transform_indices = @transform_7, window_bounds = array<i64: 8, 128>}]} {
    %c0 = arith.constant 0 : index
    %c0_0 = arith.constant 0 : index
    %0 = vector.load %arg1[%c0, %c0_0] : memref<8x1000xbf16, #tpu.memory_space<vmem>>, vector<8x1000xbf16>
    %c0_1 = arith.constant 0 : index
    %c0_2 = arith.constant 0 : index
    %1 = vector.load %arg2[%c0_1, %c0_2] : memref<1000x256xbf16, #tpu.memory_space<vmem>>, vector<1000x256xbf16>
    %cst = arith.constant dense<0.000000e+00> : vector<8x256xf32>
    %2 = tpu.matmul %0, %1, %cst {dimension_numbers = #tpu.dot_dimension_numbers<[1], [0], [0], [1], [0, 0, 1, 1], [], []>} : vector<8x1000xbf16>, vector<1000x256xbf16>, vector<8x256xf32> -> vector<8x256xf32>
    %c0_3 = arith.constant 0 : index
    %c0_4 = arith.constant 0 : index
    %3 = vector.load %arg3[%c0_3, %c0_4] : memref<3x256xf32, #tpu.memory_space<vmem>>, vector<1x256xf32>
    %4 = vector.broadcast %3 : vector<1x256xf32> to vector<8x256xf32>
    %5 = arith.addf %2, %4 : vector<8x256xf32>
    %6 = arith.negf %5 : vector<8x256xf32>
    %7 = math.exp %6 : vector<8x256xf32>
    %cst_5 = arith.constant 1.000000e+00 : f32
    %8 = vector.broadcast %cst_5 : f32 to vector<8x256xf32>
    %9 = arith.addf %8, %7 : vector<8x256xf32>
    %10 = arith.divf %8, %9 : vector<8x256xf32>
    %c1 = arith.constant 1 : index
    %c0_6 = arith.constant 0 : index
    %11 = vector.load %arg3[%c1, %c0_6] : memref<3x256xf32, #tpu.memory_space<vmem>>, vector<1x256xf32>
    %12 = vector.broadcast %11 : vector<1x256xf32> to vector<8x256xf32>
    %13 = arith.mulf %10, %12 : vector<8x256xf32>
    %c2 = arith.constant 2 : index
    %c0_7 = arith.constant 0 : index
    %14 = vector.load %arg3[%c2, %c0_7] : memref<3x256xf32, #tpu.memory_space<vmem>>, vector<1x256xf32>
    %15 = vector.broadcast %14 : vector<1x256xf32> to vector<8x256xf32>
    %16 = arith.addf %13, %15 : vector<8x256xf32>
    %17 = arith.truncf %16 : vector<8x256xf32> to vector<8x256xbf16>
    %c0_8 = arith.constant 0 : index
    %c0_9 = arith.constant 0 : index
    %18 = vector.load %arg4[%c0_8, %c0_9] : memref<256x64xbf16, #tpu.memory_space<vmem>>, vector<256x64xbf16>
    %cst_10 = arith.constant dense<0.000000e+00> : vector<8x64xf32>
    %19 = tpu.matmul %17, %18, %cst_10 {dimension_numbers = #tpu.dot_dimension_numbers<[1], [0], [0], [1], [0, 0, 1, 1], [], []>} : vector<8x256xbf16>, vector<256x64xbf16>, vector<8x64xf32> -> vector<8x64xf32>
    %c0_11 = arith.constant 0 : index
    %c0_12 = arith.constant 0 : index
    %20 = vector.load %arg5[%c0_11, %c0_12] : memref<3x64xf32, #tpu.memory_space<vmem>>, vector<1x64xf32>
    %21 = vector.broadcast %20 : vector<1x64xf32> to vector<8x64xf32>
    %22 = arith.addf %19, %21 : vector<8x64xf32>
    %23 = arith.negf %22 : vector<8x64xf32>
    %24 = math.exp %23 : vector<8x64xf32>
    %cst_13 = arith.constant 1.000000e+00 : f32
    %25 = vector.broadcast %cst_13 : f32 to vector<8x64xf32>
    %26 = arith.addf %25, %24 : vector<8x64xf32>
    %27 = arith.divf %25, %26 : vector<8x64xf32>
    %c1_14 = arith.constant 1 : index
    %c0_15 = arith.constant 0 : index
    %28 = vector.load %arg5[%c1_14, %c0_15] : memref<3x64xf32, #tpu.memory_space<vmem>>, vector<1x64xf32>
    %29 = vector.broadcast %28 : vector<1x64xf32> to vector<8x64xf32>
    %30 = arith.mulf %27, %29 : vector<8x64xf32>
    %c2_16 = arith.constant 2 : index
    %c0_17 = arith.constant 0 : index
    %31 = vector.load %arg5[%c2_16, %c0_17] : memref<3x64xf32, #tpu.memory_space<vmem>>, vector<1x64xf32>
    %32 = vector.broadcast %31 : vector<1x64xf32> to vector<8x64xf32>
    %33 = arith.addf %30, %32 : vector<8x64xf32>
    %c0_18 = arith.constant 0 : index
    %c0_19 = arith.constant 0 : index
    %34 = vector.load %arg6[%c0_18, %c0_19] : memref<64x128xf32, #tpu.memory_space<vmem>>, vector<64x128xf32>
    %cst_20 = arith.constant dense<0.000000e+00> : vector<8x128xf32>
    %35 = tpu.matmul %33, %34, %cst_20 {dimension_numbers = #tpu.dot_dimension_numbers<[1], [0], [0], [1], [0, 0, 1, 1], [], []>} : vector<8x64xf32>, vector<64x128xf32>, vector<8x128xf32> -> vector<8x128xf32>
    %c0_21 = arith.constant 0 : index
    %c0_22 = arith.constant 0 : index
    %36 = vector.load %arg7[%c0_21, %c0_22] : memref<1x128xf32, #tpu.memory_space<vmem>>, vector<1x128xf32>
    %37 = vector.broadcast %36 : vector<1x128xf32> to vector<8x128xf32>
    %38 = arith.addf %35, %37 : vector<8x128xf32>
    %cst_23 = arith.constant 0.000000e+00 : f32
    %39 = vector.broadcast %cst_23 : f32 to vector<8x128xf32>
    %40 = arith.maximumf %38, %39 : vector<8x128xf32>
    %41 = arith.negf %40 : vector<8x128xf32>
    %42 = math.exp %41 : vector<8x128xf32>
    %cst_24 = arith.constant 1.000000e+00 : f32
    %43 = vector.broadcast %cst_24 : f32 to vector<8x128xf32>
    %44 = arith.addf %43, %42 : vector<8x128xf32>
    %45 = arith.divf %43, %44 : vector<8x128xf32>
    %c0_25 = arith.constant 0 : index
    %c0_26 = arith.constant 0 : index
    %46 = vector.load %arg8[%c0_25, %c0_26] : memref<8x128xf32, #tpu.memory_space<vmem>>, vector<8x128xf32>
    tpu.vector_store %arg8[%c0_25, %c0_26], %45 {strides = array<i32>} : memref<8x128xf32, #tpu.memory_space<vmem>>, vector<8x128xf32>,
    return
  }
  func.func @transform_0(%arg0: i32) -> (i32, i32) {
    %c0_i32 = arith.constant 0 : i32
    %c0_i32_0 = arith.constant 0 : i32
    return %arg0, %c0_i32 : i32, i32
  }
  func.func @transform_1(%arg0: i32) -> (i32, i32) {
    %c0_i32 = arith.constant 0 : i32
    %c0_i32_0 = arith.constant 0 : i32
    %c0_i32_1 = arith.constant 0 : i32
    return %c0_i32, %c0_i32_0 : i32, i32
  }
  func.func @transform_2(%arg0: i32) -> (i32, i32) {
    %c0_i32 = arith.constant 0 : i32
    %c0_i32_0 = arith.constant 0 : i32
    %c0_i32_1 = arith.constant 0 : i32
    return %c0_i32, %c0_i32_0 : i32, i32
  }
  func.func @transform_3(%arg0: i32) -> (i32, i32) {
    %c0_i32 = arith.constant 0 : i32
    %c0_i32_0 = arith.constant 0 : i32
    %c0_i32_1 = arith.constant 0 : i32
    return %c0_i32, %c0_i32_0 : i32, i32
  }
  func.func @transform_4(%arg0: i32) -> (i32, i32) {
    %c0_i32 = arith.constant 0 : i32
    %c0_i32_0 = arith.constant 0 : i32
    %c0_i32_1 = arith.constant 0 : i32
    return %c0_i32, %c0_i32_0 : i32, i32
  }
  func.func @transform_5(%arg0: i32) -> (i32, i32) {
    %c0_i32 = arith.constant 0 : i32
    %c0_i32_0 = arith.constant 0 : i32
    %c0_i32_1 = arith.constant 0 : i32
    return %c0_i32, %c0_i32_0 : i32, i32
  }
  func.func @transform_6(%arg0: i32) -> (i32, i32) {
    %c0_i32 = arith.constant 0 : i32
    %c0_i32_0 = arith.constant 0 : i32
    %c0_i32_1 = arith.constant 0 : i32
    return %c0_i32, %c0_i32_0 : i32, i32
  }
  func.func @transform_7(%arg0: i32) -> (i32, i32) {
    %c0_i32 = arith.constant 0 : i32
    %c0_i32_0 = arith.constant 0 : i32
    return %arg0, %c0_i32 : i32, i32
  }
}

</mosaic_0001>

<bundles_post_ra>
// kernel: tpu_custom_call.1
= control target key start
LH: loop header
LB: loop body
LE: loop exit
PB: predicated region body
PF: predicated region fallthrough
CT: control target
= control target key end

     0   :  { %12 = vsyncpa [#allocation3], 0  ;;  %s2063_s0 = inlined_call_operand.vmem [shape: bf16[8,1000], index: 0, kind: input, shape index: {}]   ;;  %s2064_s1 = inlined_call_operand.hbm [shape: bf16[1000,256], index: 1, kind: input, shape index: {}]   ;;  %s2065_s2 = inlined_call_operand.vmem [shape: f32[3,256], index: 2, kind: input, shape index: {}]   ;;  %s2066_s3 = inlined_call_operand.vmem [shape: bf16[256,64], index: 3, kind: input, shape index: {}]   ;;  %s2067_s4 = inlined_call_operand.vmem [shape: f32[3,64], index: 4, kind: input, shape index: {}]   ;;  %s2068_s5 = inlined_call_operand.vmem [shape: f32[64,128], index: 5, kind: input, shape index: {}]   ;;  %s2069_s6 = inlined_call_operand.vmem [shape: f32[1,128], index: 6, kind: input, shape index: {}]   ;;  %s2070_s7 = inlined_call_operand.hbm [shape: f32[8,128], index: 7, kind: output, shape index: {}]  }
   0x1   :  { %13 = vsyncpa [#allocation4], 0  ;;  %s1875_s24 = smov [#allocation2]   ;;  %s1827_s28 = scalar_lea.hbm %s2064_s1, 16000 }
   0x2   :  { %s21_s25 = sshll.u32 %s1875_s24, 4  ;;  %p1828_p0 = scmp.ne.s32.totalorder %s2064_s1, %s1827_s28  ;;  %s22_s25 = int_to_ptr.vmem [resolvable:$true] %s21_s25 }
   0x3   :  { %p1831_p1 = scmp.lt.u32.totalorder %s1827_s28, %s2064_s1 }
   0x5   :  { %p1833_p2 = pnand %p1831_p1, %p1828_p0 }
   0x7   :  { %1836 = shalt.err (!%p1833_p2)
}
   0x8   :  { %s1837_s10 = scalar_lea.vmem %s22_s25, 16000  ;;  %p1842_p4 = scmp.lt.s32.totalorder %s22_s25, %s22_s25 }
   0x9   :  { %p1838_p3 = scmp.ne.s32.totalorder %s22_s25, %s1837_s10  ;;  %p1843_p5 = scmp.lt.s32.totalorder %s1837_s10, %s1837_s10 }
   0xb   :  { %p1844_p6 = por %p1843_p5, %p1842_p4 }
   0xd   :  { %p1845_p7 = pnand %p1844_p6, %p1838_p3 }
   0xf   :  { %1848 = shalt.err (!%p1845_p7)
}
  0x10   :  { %s1876_s11 = smov 128   ;;  %s1877_s12 = smov 8  }
  0x11   :  { %27 = dma.hbm_to_vmem [thread:$0]  %s2064_s1, 16000, %s22_s25, [#allocation3], %s1876_s11, %s1876_s11, %s1877_s12  }
  0x12   :  { %1871 = dma.done.wait [#allocation3], 16000  }
  0x13   :  { %1872 = vsyncadd [#allocation3], 4294951296  ;;  %v1599_v0 = vld [vmem:[#allocation2 + $0x104] ss:$8 sps:$4 sm:$0xff]   ;;  %v1601_v1 = vld [vmem:[#allocation2 + $0x100] ss:$8 sps:$4 sm:$0xff]  }
  0x14   :  { %887 = vmatprep.subr.bf16.mxu0 %v1599_v0  ;;  %v1602_v2 = vld [vmem:[#allocation2 + $0x4] ss:$8 sps:$4 sm:$0xff]   ;;  %v1604_v3 = vld [vmem:[#allocation2] ss:$8 sps:$4 sm:$0xff]   ;;  %v1605_v4 = vld [vmem:[#allocation2 + $0x114] ss:$8 sps:$4 sm:$0xff]  }
  0x15   :  { %888 = vmatpush1.bf16.msra.mxu0 %v1601_v1  ;;  %v1607_v5 = vld [vmem:[#allocation2 + $0x110] ss:$8 sps:$4 sm:$0xff]   ;;  %846 = vmatprep.subr.bf16.mxu1 %v1602_v2  ;;  %v1608_v6 = vld [vmem:[#allocation2 + $0x14] ss:$8 sps:$4 sm:$0xff]   ;;  %v1611_v8 = vld [vmem:[#allocation2 + $0x124] ss:$8 sps:$4 sm:$0xff]  }
  0x16   :  { %847 = vmatpush1.bf16.msra.mxu1 %v1604_v3  ;;  %889 = vmatprep.subr.bf16.mxu0 %v1605_v4  ;;  %v1610_v7 = vld [vmem:[#allocation2 + $0x10] ss:$8 sps:$4 sm:$0xff]   ;;  %v1613_v9 = vld [vmem:[#allocation2 + $0x120] ss:$8 sps:$4 sm:$0xff]   ;;  %v1614_v10 = vld [vmem:[#allocation2 + $0x24] ss:$8 sps:$4 sm:$0xff]  }
  0x17   :  { %848 = vmatprep.subr.bf16.mxu1 %v1608_v6  ;;  %v1617_v11 = vld [vmem:[#allocation2 + $0x134] ss:$8 sps:$4 sm:$0xff]   ;;  %v1616_v12 = vld [vmem:[#allocation2 + $0x20] ss:$8 sps:$4 sm:$0xff]   ;;  %v1619_v14 = vld [vmem:[#allocation2 + $0x130] ss:$8 sps:$4 sm:$0xff]  }
  0x18   :  { %v1620_v13 = vld [vmem:[#allocation2 + $0x34] ss:$8 sps:$4 sm:$0xff]   ;;  %v1623_v15 = vld [vmem:[#allocation2 + $0x144] ss:$8 sps:$4 sm:$0xff]   ;;  %v1622_v16 = vld [vmem:[#allocation2 + $0x30] ss:$8 sps:$4 sm:$0xff]  }
  0x19   :  { %890 = vmatpush1.bf16.msra.mxu0 %v1607_v5  ;;  %v1626_v17 = vld [vmem:[#allocation2 + $0x44] ss:$8 sps:$4 sm:$0xff]   ;;  %v1625_v18 = vld [vmem:[#allocation2 + $0x140] ss:$8 sps:$4 sm:$0xff]   ;;  %v1629_v19 = vld [vmem:[#allocation2 + $0x154] ss:$8 sps:$4 sm:$0xff]  }
  0x1a   :  { %891 = vmatprep.subr.bf16.mxu0 %v1611_v8  ;;  %849 = vmatpush1.bf16.msra.mxu1 %v1610_v7  ;;  %v1628_v20 = vld [vmem:[#allocation2 + $0x40] ss:$8 sps:$4 sm:$0xff]   ;;  %v1632_v21 = vld [vmem:[#allocation2 + $0x54] ss:$8 sps:$4 sm:$0xff]   ;;  %v1631_v22 = vld [vmem:[#allocation2 + $0x150] ss:$8 sps:$4 sm:$0xff]  }
  0x1b   :  { %850 = vmatprep.subr.bf16.mxu1 %v1614_v10  ;;  %v1635_v23 = vld [vmem:[#allocation2 + $0x164] ss:$8 sps:$4 sm:$0xff]   ;;  %v1634_v24 = vld [vmem:[#allocation2 + $0x50] ss:$8 sps:$4 sm:$0xff]   ;;  %v1637_v26 = vld [vmem:[#allocation2 + $0x160] ss:$8 sps:$4 sm:$0xff]  }
  0x1c   :  { %v1638_v25 = vld [vmem:[#allocation2 + $0x64] ss:$8 sps:$4 sm:$0xff]   ;;  %v1641_v27 = vld [vmem:[#allocation2 + $0x174] ss:$8 sps:$4 sm:$0xff]   ;;  %v1640_v28 = vld [vmem:[#allocation2 + $0x60] ss:$8 sps:$4 sm:$0xff]  }
  0x1d   :  { %892 = vmatpush1.bf16.msra.mxu0 %v1613_v9  ;;  %v1644_v29 = vld [vmem:[#allocation2 + $0x74] ss:$8 sps:$4 sm:$0xff]   ;;  %v1643_v30 = vld [vmem:[#allocation2 + $0x170] ss:$8 sps:$4 sm:$0xff]   ;;  %v1647_v31 = vld [vmem:[#allocation2 + $0x184] ss:$8 sps:$4 sm:$0xff]  }
  0x1e   :  { %893 = vmatprep.subr.bf16.mxu0 %v1617_v11  ;;  %851 = vmatpush1.bf16.msra.mxu1 %v1616_v12  ;;  %v1646_v32 = vld [vmem:[#allocation2 + $0x70] ss:$8 sps:$4 sm:$0xff]   ;;  %v1650_v33 = vld [vmem:[#allocation2 + $0x84] ss:$8 sps:$4 sm:$0xff]   ;;  %v1649_v34 = vld [vmem:[#allocation2 + $0x180] ss:$8 sps:$4 sm:$0xff]  }
  0x1f   :  { %852 = vmatprep.subr.bf16.mxu1 %v1620_v13  ;;  %v1653_v35 = vld [vmem:[#allocation2 + $0x194] ss:$8 sps:$4 sm:$0xff]   ;;  %v1652_v36 = vld [vmem:[#allocation2 + $0x80] ss:$8 sps:$4 sm:$0xff]   ;;  %v1655_v38 = vld [vmem:[#allocation2 + $0x190] ss:$8 sps:$4 sm:$0xff]  }
  0x20   :  { %v1656_v37 = vld [vmem:[#allocation2 + $0x94] ss:$8 sps:$4 sm:$0xff]   ;;  %v1659_v39 = vld [vmem:[#allocation2 + $0x1a4] ss:$8 sps:$4 sm:$0xff]   ;;  %v1658_v40 = vld [vmem:[#allocation2 + $0x90] ss:$8 sps:$4 sm:$0xff]  }
  0x21   :  { %894 = vmatpush1.bf16.msra.mxu0 %v1619_v14  ;;  %v1662_v41 = vld [vmem:[#allocation2 + $0xa4] ss:$8 sps:$4 sm:$0xff]   ;;  %v1661_v42 = vld [vmem:[#allocation2 + $0x1a0] ss:$8 sps:$4 sm:$0xff]   ;;  %v1665_v43 = vld [vmem:[#allocation2 + $0x1b4] ss:$8 sps:$4 sm:$0xff]  }
  0x22   :  { %895 = vmatprep.subr.bf16.mxu0 %v1623_v15  ;;  %853 = vmatpush1.bf16.msra.mxu1 %v1622_v16  ;;  %v1664_v44 = vld [vmem:[#allocation2 + $0xa0] ss:$8 sps:$4 sm:$0xff]   ;;  %v1668_v45 = vld [vmem:[#allocation2 + $0xb4] ss:$8 sps:$4 sm:$0xff]   ;;  %v1667_v47 = vld [vmem:[#allocation2 + $0x1b0] ss:$8 sps:$4 sm:$0xff]  }
  0x23   :  { %854 = vmatprep.subr.bf16.mxu1 %v1626_v17  ;;  %v43_v46 = vld [vmem:[%s2063_s0 + $0x8] sm:$0xff]  ;;  %v42_v50 = vld [vmem:[%s2063_s0] sm:$0xff]  ;;  %v1670_v51 = vld [vmem:[#allocation2 + $0xb0] ss:$8 sps:$4 sm:$0xff]   ;;  %vm835_vm0 = vcmask 850944   ;;  %vm839_vm1 = vcmask 1043456  }
  0x24   :  { %v1360_v48 = vcombine.high %v43_v46, %v43_v46  ;;  %v1671_v49 = vld [vmem:[#allocation2 + $0x1c4] ss:$8 sps:$4 sm:$0xff]   ;;  %v1358_v52 = vcombine.high %v42_v50, %v42_v50  ;;  %v1673_v54 = vld [vmem:[#allocation2 + $0x1c0] ss:$8 sps:$4 sm:$0xff]   ;;  %v1677_v55 = vld [vmem:[#allocation2 + $0x1d4] ss:$8 sps:$4 sm:$0xff]   ;;  %v1359_v5 = vcombine.low %v43_v46, %v43_v46  ;;  %v1357_v8 = vcombine.low %v42_v50, %v42_v50 }
  0x25   :  { %896 = vmatpush1.bf16.msra.mxu0 %v1625_v18  ;;  %v1674_v53 = vld [vmem:[#allocation2 + $0xc4] ss:$8 sps:$4 sm:$0xff]   ;;  %v1676_v56 = vld [vmem:[#allocation2 + $0xc0] ss:$8 sps:$4 sm:$0xff]   ;;  %v1680_v57 = vld [vmem:[#allocation2 + $0xd4] ss:$8 sps:$4 sm:$0xff]  }
  0x26   :  { %897 = vmatprep.subr.bf16.mxu0 %v1629_v19  ;;  %855 = vmatpush1.bf16.msra.mxu1 %v1628_v20  ;;  %v1679_v58 = vld [vmem:[#allocation2 + $0x1d0] ss:$8 sps:$4 sm:$0xff]   ;;  %v1683_v59 = vld [vmem:[#allocation2 + $0x1e4] ss:$8 sps:$4 sm:$0xff]   ;;  %v1685_v62 = vld [vmem:[#allocation2 + $0x1e0] ss:$8 sps:$4 sm:$0xff]  }
  0x27   :  { %856 = vmatprep.subr.bf16.mxu1 %v1632_v21  ;;  %919 = vmatprep.mubr.bf16.mxu0 %v1360_v48  ;;  %v1682_v60 = vld [vmem:[#allocation2 + $0xd0] ss:$8 sps:$4 sm:$0xff]   ;;  %v1686_v61 = vld [vmem:[#allocation2 + $0xe4] ss:$8 sps:$4 sm:$0xff]   ;;  %v1689_v63 = vld [vmem:[#allocation2 + $0x1f4] ss:$8 sps:$4 sm:$0xff]  }
  0x28   :  { %878 = vmatprep.mubr.bf16.mxu1 %v1358_v52  ;;  %v1688_v0 = vld [vmem:[#allocation2 + $0xe0] ss:$8 sps:$4 sm:$0xff]   ;;  %v1692_v1 = vld [vmem:[#allocation2 + $0xf4] ss:$8 sps:$4 sm:$0xff]   ;;  %v1691_v2 = vld [vmem:[#allocation2 + $0x1f0] ss:$8 sps:$4 sm:$0xff]  }
  0x29   :  { %898 = vmatpush1.bf16.msra.mxu0 %v1631_v22  ;;  %v1699_v3 = vld [vmem:[#allocation2 + $0x204] ss:$8 sps:$4 sm:$0xff]   ;;  %v1694_v4 = vld [vmem:[#allocation2 + $0xf0] ss:$8 sps:$4 sm:$0xff]   ;;  %v1697_v7 = vld [vmem:[#allocation2 + $0x200] ss:$8 sps:$4 sm:$0xff]  }
  0x2a   :  { %899 = vmatprep.subr.bf16.mxu0 %v1635_v23  ;;  %857 = vmatpush1.bf16.msra.mxu1 %v1634_v24  ;;  %v1704_v6 = vld [vmem:[#allocation2 + $0x304] ss:$8 sps:$4 sm:$0xff]   ;;  %v1707_v9 = vld [vmem:[#allocation2 + $0x214] ss:$8 sps:$4 sm:$0xff]   ;;  %v1702_v10 = vld [vmem:[#allocation2 + $0x300] ss:$8 sps:$4 sm:$0xff]  }
  0x2b   :  { %858 = vmatprep.subr.bf16.mxu1 %v1638_v25  ;;  %v1710_v11 = vld [vmem:[#allocation2 + $0x314] ss:$8 sps:$4 sm:$0xff]   ;;  %v1705_v12 = vld [vmem:[#allocation2 + $0x210] ss:$8 sps:$4 sm:$0xff]   ;;  %v1713_v13 = vld [vmem:[#allocation2 + $0x224] ss:$8 sps:$4 sm:$0xff]  }
  0x2c   :  { %v1708_v14 = vld [vmem:[#allocation2 + $0x310] ss:$8 sps:$4 sm:$0xff]   ;;  %v1716_v15 = vld [vmem:[#allocation2 + $0x324] ss:$8 sps:$4 sm:$0xff]   ;;  %v1711_v16 = vld [vmem:[#allocation2 + $0x220] ss:$8 sps:$4 sm:$0xff]  }
  0x2d   :  { %900 = vmatpush1.bf16.msra.mxu0 %v1637_v26  ;;  %v1719_v17 = vld [vmem:[#allocation2 + $0x234] ss:$8 sps:$4 sm:$0xff]   ;;  %v1714_v18 = vld [vmem:[#allocation2 + $0x320] ss:$8 sps:$4 sm:$0xff]   ;;  %v1717_v20 = vld [vmem:[#allocation2 + $0x230] ss:$8 sps:$4 sm:$0xff]  }
  0x2e   :  { %901 = vmatprep.subr.bf16.mxu0 %v1641_v27  ;;  %859 = vmatpush1.bf16.msra.mxu1 %v1640_v28  ;;  %v1722_v19 = vld [vmem:[#allocation2 + $0x334] ss:$8 sps:$4 sm:$0xff]   ;;  %v1725_v21 = vld [vmem:[#allocation2 + $0x244] ss:$8 sps:$4 sm:$0xff]   ;;  %v1720_v22 = vld [vmem:[#allocation2 + $0x330] ss:$8 sps:$4 sm:$0xff]  }
  0x2f   :  { %860 = vmatprep.subr.bf16.mxu1 %v1644_v29  ;;  %v1728_v23 = vld [vmem:[#allocation2 + $0x344] ss:$8 sps:$4 sm:$0xff]   ;;  %v1723_v24 = vld [vmem:[#allocation2 + $0x240] ss:$8 sps:$4 sm:$0xff]   ;;  %v1731_v25 = vld [vmem:[#allocation2 + $0x254] ss:$8 sps:$4 sm:$0xff]  }
  0x30   :  { %v1726_v26 = vld [vmem:[#allocation2 + $0x340] ss:$8 sps:$4 sm:$0xff]   ;;  %v1734_v27 = vld [vmem:[#allocation2 + $0x354] ss:$8 sps:$4 sm:$0xff]   ;;  %v1729_v28 = vld [vmem:[#allocation2 + $0x250] ss:$8 sps:$4 sm:$0xff]  }
  0x31   :  { %902 = vmatpush1.bf16.msra.mxu0 %v1643_v30  ;;  %v1732_v29 = vld [vmem:[#allocation2 + $0x350] ss:$8 sps:$4 sm:$0xff]   ;;  %v1750_v46 = vld [vmem:[#allocation2 + $0x380] ss:$8 sps:$4 sm:$0xff]   ;;  %vm1879_vm2 = vmmov 0   ;;  %vm1260_vm3 = vcmask 523264  }
  0x32   :  { %903 = vmatprep.subr.bf16.mxu0 %v1647_v31  ;;  %861 = vmatpush1.bf16.msra.mxu1 %v1646_v32  ;;  %v1943_v30 = vld [vmem:[%s2063_s0 + $0x18] sm:$0xff]  ;;  %v1737_v31 = vld [vmem:[#allocation2 + $0x264] ss:$8 sps:$4 sm:$0xff]   ;;  %v1759_v52 = vld [vmem:[#allocation2 + $0x2a0] ss:$8 sps:$4 sm:$0xff]  }
  0x33   :  { %862 = vmatprep.subr.bf16.mxu1 %v1650_v33  ;;  %v1364_v32 = vcombine.high %v1943_v30, %v1943_v30  ;;  %v1950_v33 = vld [vmem:[%s2063_s0 + $0x10] sm:$0xff] }
  0x34   :  { %v1753_v48 = vld [vmem:[#allocation2 + $0x290] ss:$8 sps:$4 sm:$0xff]  }
  0x35   :  { %904 = vmatpush1.bf16.msra.mxu0 %v1649_v34  ;;  %v1735_v34 = vld [vmem:[#allocation2 + $0x260] ss:$8 sps:$4 sm:$0xff]   ;;  %v1756_v50 = vld [vmem:[#allocation2 + $0x390] ss:$8 sps:$4 sm:$0xff]  }
  0x36   :  { %905 = vmatprep.subr.bf16.mxu0 %v1653_v35  ;;  %863 = vmatpush1.bf16.msra.mxu1 %v1652_v36  ;;  %v1740_v35 = vld [vmem:[#allocation2 + $0x364] ss:$8 sps:$4 sm:$0xff]   ;;  %v1362_v36 = vcombine.high %v1950_v33, %v1950_v33 }
  0x37   :  { %864 = vmatprep.subr.bf16.mxu1 %v1656_v37  ;;  %v1743_v37 = vld [vmem:[#allocation2 + $0x274] ss:$8 sps:$4 sm:$0xff]  }
  0x39   :  { %906 = vmatpush1.bf16.msra.mxu0 %v1655_v38  ;;  %v1738_v38 = vld [vmem:[#allocation2 + $0x360] ss:$8 sps:$4 sm:$0xff]  }
  0x3a   :  { %907 = vmatprep.subr.bf16.mxu0 %v1659_v39  ;;  %865 = vmatpush1.bf16.msra.mxu1 %v1658_v40  ;;  %v1746_v39 = vld [vmem:[#allocation2 + $0x374] ss:$8 sps:$4 sm:$0xff]   ;;  %v1741_v40 = vld [vmem:[#allocation2 + $0x270] ss:$8 sps:$4 sm:$0xff]  }
  0x3b   :  { %866 = vmatprep.subr.bf16.mxu1 %v1662_v41  ;;  %v1749_v41 = vld [vmem:[#allocation2 + $0x284] ss:$8 sps:$4 sm:$0xff]  }
  0x3d   :  { %908 = vmatpush1.bf16.msra.mxu0 %v1661_v42  ;;  %v1744_v42 = vld [vmem:[#allocation2 + $0x370] ss:$8 sps:$4 sm:$0xff]  }
  0x3e   :  { %909 = vmatprep.subr.bf16.mxu0 %v1665_v43  ;;  %867 = vmatpush1.bf16.msra.mxu1 %v1664_v44  ;;  %v1752_v43 = vld [vmem:[#allocation2 + $0x384] ss:$8 sps:$4 sm:$0xff]   ;;  %v1747_v44 = vld [vmem:[#allocation2 + $0x280] ss:$8 sps:$4 sm:$0xff]  }
  0x3f   :  { %868 = vmatprep.subr.bf16.mxu1 %v1668_v45  ;;  %v1755_v45 = vld [vmem:[#allocation2 + $0x294] ss:$8 sps:$4 sm:$0xff]  }
  0x41   :  { %910 = vmatpush1.bf16.msra.mxu0 %v1667_v47  ;;  %v1758_v47 = vld [vmem:[#allocation2 + $0x394] ss:$8 sps:$4 sm:$0xff]  }
  0x42   :  { %911 = vmatprep.subr.bf16.mxu0 %v1671_v49  ;;  %869 = vmatpush1.bf16.msra.mxu1 %v1670_v51  ;;  %v1761_v49 = vld [vmem:[#allocation2 + $0x2a4] ss:$8 sps:$4 sm:$0xff]  }
  0x43   :  { %870 = vmatprep.subr.bf16.mxu1 %v1674_v53  ;;  %v1764_v51 = vld [vmem:[#allocation2 + $0x3a4] ss:$8 sps:$4 sm:$0xff]   ;;  %v1767_v53 = vld [vmem:[#allocation2 + $0x2b4] ss:$8 sps:$4 sm:$0xff]  }
  0x45   :  { %912 = vmatpush1.bf16.msra.mxu0 %v1673_v54  ;;  %v1762_v54 = vld [vmem:[#allocation2 + $0x3a0] ss:$8 sps:$4 sm:$0xff]  }
  0x46   :  { %913 = vmatprep.subr.bf16.mxu0 %v1677_v55  ;;  %871 = vmatpush1.bf16.msra.mxu1 %v1676_v56  ;;  %v1770_v55 = vld [vmem:[#allocation2 + $0x3b4] ss:$8 sps:$4 sm:$0xff]   ;;  %v1765_v56 = vld [vmem:[#allocation2 + $0x2b0] ss:$8 sps:$4 sm:$0xff]  }
  0x47   :  { %872 = vmatprep.subr.bf16.mxu1 %v1680_v57  ;;  %v1773_v57 = vld [vmem:[#allocation2 + $0x2c4] ss:$8 sps:$4 sm:$0xff]  }
  0x49   :  { %914 = vmatpush1.bf16.msra.mxu0 %v1679_v58  ;;  %v1768_v58 = vld [vmem:[#allocation2 + $0x3b0] ss:$8 sps:$4 sm:$0xff]  }
  0x4a   :  { %915 = vmatprep.subr.bf16.mxu0 %v1683_v59  ;;  %873 = vmatpush1.bf16.msra.mxu1 %v1682_v60  ;;  %v1776_v59 = vld [vmem:[#allocation2 + $0x3c4] ss:$8 sps:$4 sm:$0xff]   ;;  %v1771_v60 = vld [vmem:[#allocation2 + $0x2c0] ss:$8 sps:$4 sm:$0xff]  }
  0x4b   :  { %874 = vmatprep.subr.bf16.mxu1 %v1686_v61  ;;  %v1779_v61 = vld [vmem:[#allocation2 + $0x2d4] ss:$8 sps:$4 sm:$0xff]  }
  0x4d   :  { %916 = vmatpush1.bf16.msra.mxu0 %v1685_v62  ;;  %v1774_v62 = vld [vmem:[#allocation2 + $0x3c0] ss:$8 sps:$4 sm:$0xff]  }
  0x4e   :  { %917 = vmatprep.subr.bf16.mxu0 %v1689_v63  ;;  %875 = vmatpush1.bf16.msra.mxu1 %v1688_v0  ;;  %v1782_v63 = vld [vmem:[#allocation2 + $0x3d4] ss:$8 sps:$4 sm:$0xff]   ;;  %v1777_v0 = vld [vmem:[#allocation2 + $0x2d0] ss:$8 sps:$4 sm:$0xff]  }
  0x4f   :  { %876 = vmatprep.subr.bf16.mxu1 %v1692_v1  ;;  %v170_v1 = vld [vmem:[#allocation2 + $0x3e0] sm:$0xff] }
  0x51   :  { %918 = vmatpush1.bf16.msra.mxu0 %v1691_v2  ;;  %v1785_v2 = vld [vmem:[#allocation2 + $0x2e4] ss:$8 sps:$4 sm:$0xff]  }
  0x52   :  { %928 = vmatprep.subr.bf16.mxu0 %v1699_v3  ;;  %877 = vmatpush1.bf16.msra.mxu1 %v1694_v4  ;;  %v1780_v3 = vld [vmem:[#allocation2 + $0x3d0] ss:$8 sps:$4 sm:$0xff]   ;;  %v1490_v4 = vcombine.high %v170_v1, %v170_v1 }
  0x53   :  { %969 = vmatprep.subr.bf16.mxu1 %v1704_v6  ;;  %v1783_v6 = vld [vmem:[#allocation2 + $0x2e0] ss:$8 sps:$4 sm:$0xff]  }
  0x54   :  { %920 = vmatmul.mubr.bf16.vlgmr.msra.gmra.mrb[0].mxu0 %v1359_v5  ;;  %v1489_v5 = vcombine.low %v170_v1, %v170_v1 }
  0x55   :  { %929 = vmatpush1.bf16.msra.mxu0 %v1697_v7  ;;  %879 = vmatmul.mubr.bf16.vlgmr.msra.gmra.mrb[0].mxu1 %v1357_v8  ;;  %v1789_v7 = vld [vmem:[#allocation2 + $0x2f4] ss:$8 sps:$4 sm:$0xff]  }
  0x56   :  { %930 = vmatprep.subr.bf16.mxu0 %v1707_v9  ;;  %970 = vmatpush1.bf16.msra.mxu1 %v1702_v10  ;;  %v841_v8 = vsel %vm839_vm1, %v1489_v5, 0  ;;  %v1787_v9 = vld [vmem:[#allocation2 + $0x2f0] ss:$8 sps:$4 sm:$0xff]   ;;  %v1363_v10 = vcombine.low %v1943_v30, %v1943_v30 }
  0x57   :  { %971 = vmatprep.subr.bf16.mxu1 %v1710_v11  ;;  %1492 = vmatprep.mubr.msk.bf16.mxu1 %vm835_vm0, %v1364_v32  ;;  %v1361_v11 = vcombine.low %v1950_v33, %v1950_v33  ;;  %v173_v32 = vlaneseq }
  0x58   :  { %960 = vmatprep.mubr.bf16.mxu0 %v1362_v36 }
  0x59   :  { %931 = vmatpush1.bf16.msra.mxu0 %v1705_v12  ;;  %v1795_v12 = vld [vmem:[%s2066_s3 + $0x40] sm:$0xff]   ;;  %v174_v33 = vshrl.u32 %v173_v32, 7 }
  0x5a   :  { %932 = vmatprep.subr.bf16.mxu0 %v1713_v13  ;;  %972 = vmatpush1.bf16.msra.mxu1 %v1708_v14  ;;  %v1796_v13 = vld [vmem:[%s2066_s3] sm:$0xff]   ;;  %v1797_v14 = vld [vmem:[%s2066_s3 + $0x48] sm:$0xff]  }
  0x5b   :  { %973 = vmatprep.subr.bf16.mxu1 %v1716_v15  ;;  %v1798_v15 = vld [vmem:[%s2066_s3 + $0x8] sm:$0xff]   ;;  %v179_v36 = vsub.s32 1, %v174_v33 }
  0x5d   :  { %933 = vmatpush1.bf16.msra.mxu0 %v1711_v16  ;;  %v1799_v16 = vld [vmem:[%s2066_s3 + $0x50] sm:$0xff]  }
  0x5e   :  { %934 = vmatprep.subr.bf16.mxu0 %v1719_v17  ;;  %974 = vmatpush1.bf16.msra.mxu1 %v1714_v18  ;;  %v1800_v17 = vld [vmem:[%s2066_s3 + $0x10] sm:$0xff]   ;;  %v1801_v18 = vld [vmem:[%s2066_s3 + $0x58] sm:$0xff]  }
  0x5f   :  { %975 = vmatprep.subr.bf16.mxu1 %v1722_v19  ;;  %v1802_v19 = vld [vmem:[%s2066_s3 + $0x18] sm:$0xff]  }
  0x61   :  { %935 = vmatpush1.bf16.msra.mxu0 %v1717_v20  ;;  %v1803_v20 = vld [vmem:[%s2066_s3 + $0x60] sm:$0xff]  }
  0x62   :  { %936 = vmatprep.subr.bf16.mxu0 %v1725_v21  ;;  %976 = vmatpush1.bf16.msra.mxu1 %v1720_v22  ;;  %v1804_v21 = vld [vmem:[%s2066_s3 + $0x20] sm:$0xff]   ;;  %v1805_v22 = vld [vmem:[%s2066_s3 + $0x68] sm:$0xff]  }
  0x63   :  { %977 = vmatprep.subr.bf16.mxu1 %v1728_v23  ;;  %v1806_v23 = vld [vmem:[%s2066_s3 + $0x28] sm:$0xff]  }
  0x65   :  { %937 = vmatpush1.bf16.msra.mxu0 %v1723_v24  ;;  %v1807_v24 = vld [vmem:[%s2066_s3 + $0x70] sm:$0xff]  }
  0x66   :  { %938 = vmatprep.subr.bf16.mxu0 %v1731_v25  ;;  %978 = vmatpush1.bf16.msra.mxu1 %v1726_v26  ;;  %v1808_v25 = vld [vmem:[%s2066_s3 + $0x30] sm:$0xff]   ;;  %v1809_v26 = vld [vmem:[%s2066_s3 + $0x78] sm:$0xff]  }
  0x67   :  { %979 = vmatprep.subr.bf16.mxu1 %v1734_v27  ;;  %v1810_v27 = vld [vmem:[%s2066_s3 + $0x38] sm:$0xff]   ;;  %s1881_s3 = smov [#allocation5]  }
  0x68   :  { %s1348_s30 = sshll.u32 %s1881_s3, 4  ;;  %s1349_s30 = int_to_ptr.vmem [resolvable:$true] %s1348_s30 }
  0x69   :  { %939 = vmatpush1.bf16.msra.mxu0 %v1729_v28  ;;  %p1854_p9 = scmp.lt.s32.totalorder %s1349_s30, %s1349_s30 }
  0x6a   :  { %940 = vmatprep.subr.bf16.mxu0 %v1737_v31  ;;  %980 = vmatpush1.bf16.msra.mxu1 %v1732_v29 }
  0x6b   :  { %981 = vmatprep.subr.bf16.mxu1 %v1740_v35  ;;  %v171_v35 = vld [vmem:[%s2065_s2] ss:$4 sm:$0x3] }
  0x6d   :  { %941 = vmatpush1.bf16.msra.mxu0 %v1735_v34  ;;  %v175_v34 = vsub.s32 0, %v174_v33  ;;  %v1515_v33 = vld [vmem:[%s2067_s4 + $0x1] ss:$0 sm:$0xff] }
  0x6e   :  { %942 = vmatprep.subr.bf16.mxu0 %v1743_v37  ;;  %982 = vmatpush1.bf16.msra.mxu1 %v1738_v38  ;;  %v180_v38 = vrot.slane %v171_v35, %v179_v36 }
  0x6f   :  { %983 = vmatprep.subr.bf16.mxu1 %v1746_v39  ;;  %v176_v37 = vrot.slane %v171_v35, %v175_v34  ;;  %v1516_v35 = vld [vmem:[%s2067_s4 + $0x2] ss:$0 sm:$0xff] }
  0x71   :  { %943 = vmatpush1.bf16.msra.mxu0 %v1741_v40 }
  0x72   :  { %944 = vmatprep.subr.bf16.mxu0 %v1749_v41  ;;  %984 = vmatpush1.bf16.msra.mxu1 %v1744_v42 }
  0x73   :  { %985 = vmatprep.subr.bf16.mxu1 %v1752_v43 }
  0x75   :  { %945 = vmatpush1.bf16.msra.mxu0 %v1747_v44 }
  0x76   :  { %946 = vmatprep.subr.bf16.mxu0 %v1755_v45  ;;  %986 = vmatpush1.bf16.msra.mxu1 %v1750_v46 }
  0x77   :  { %987 = vmatprep.subr.bf16.mxu1 %v1758_v47 }
  0x79   :  { %947 = vmatpush1.bf16.msra.mxu0 %v1753_v48 }
  0x7a   :  { %948 = vmatprep.subr.bf16.mxu0 %v1761_v49  ;;  %988 = vmatpush1.bf16.msra.mxu1 %v1756_v50 }
  0x7b   :  { %989 = vmatprep.subr.bf16.mxu1 %v1764_v51 }
  0x7d   :  { %949 = vmatpush1.bf16.msra.mxu0 %v1759_v52 }
  0x7e   :  { %950 = vmatprep.subr.bf16.mxu0 %v1767_v53  ;;  %990 = vmatpush1.bf16.msra.mxu1 %v1762_v54 }
  0x7f   :  { %991 = vmatprep.subr.bf16.mxu1 %v1770_v55 }
  0x81   :  { %951 = vmatpush1.bf16.msra.mxu0 %v1765_v56 }
  0x82   :  { %952 = vmatprep.subr.bf16.mxu0 %v1773_v57  ;;  %992 = vmatpush1.bf16.msra.mxu1 %v1768_v58 }
  0x83   :  { %993 = vmatprep.subr.bf16.mxu1 %v1776_v59  ;;  %v1495_v59 = vld [vmem:[%s2065_s2 + $0x1] ss:$4 sm:$0x3] }
  0x85   :  { %953 = vmatpush1.bf16.msra.mxu0 %v1771_v60  ;;  %v1496_v60 = vld [vmem:[%s2065_s2 + $0x2] ss:$4 sm:$0x3] }
  0x86   :  { %954 = vmatprep.subr.bf16.mxu0 %v1779_v61  ;;  %994 = vmatpush1.bf16.msra.mxu1 %v1774_v62  ;;  %v1028_v61 = vrot.slane %v1495_v59, %v175_v34  ;;  %v1032_v62 = vrot.slane %v1495_v59, %v179_v36  ;;  %v1047_v1 = vrot.slane %v1496_v60, %v179_v36 }
  0x87   :  { %995 = vmatprep.subr.bf16.mxu1 %v1782_v63  ;;  %v1043_v63 = vrot.slane %v1496_v60, %v175_v34 }
  0x89   :  { %955 = vmatpush1.bf16.msra.mxu0 %v1777_v0 }
  0x8a   :  { %956 = vmatprep.subr.bf16.mxu0 %v1785_v2  ;;  %996 = vmatpush1.bf16.msra.mxu1 %v1780_v3 }
  0x8b   :  { %1491 = vmatprep.subr.msk.bf16.mxu1 %vm839_vm1, %v1490_v4 }
  0x8d   :  { %957 = vmatpush1.bf16.msra.mxu0 %v1783_v6 }
  0x8e   :  { %958 = vmatprep.subr.bf16.mxu0 %v1789_v7  ;;  %998 = vmatpush1.bf16.msra.mxu1 %v841_v8 }
  0x8f   :  { %1520 = vmatprep.subr.bf16.mxu1 %v1795_v12  ;;  %v1878_v12 = vmov 0.0|0.0  }
  0x91   :  { %959 = vmatpush1.bf16.msra.mxu0 %v1787_v9  ;;  %1002 = vmatmul.mubr.bf16.vlgmr.msra.gmra.mrb[4].mxu1 %v1363_v10  ;;  %v1245_v9 = vld [vmem:[%s2068_s5] sm:$0xff]  ;;  %v1246_v10 = vld [vmem:[%s2068_s5 + $0x8] sm:$0xff] }
  0x92   :  { %1521 = vmatpush3.bf16.msra.mxu1 %v1796_v13  ;;  %1570 = vmatprep.subr.bf16.mxu0 %v1878_v12  ;;  %v1247_v13 = vld [vmem:[%s2068_s5 + $0x10] sm:$0xff] }
  0x93   :  { %1522 = vmatprep.subr.bf16.mxu1 %v1797_v14  ;;  %v1248_v14 = vld [vmem:[%s2068_s5 + $0x18] sm:$0xff] }
  0x94   :  { %961 = vmatmul.mubr.bf16.vlgmr.msra.gmra.mrb[0].mxu0 %v1361_v11  ;;  %v1571_v11 = vpack.c.bf16 %v1246_v10, %v1245_v9 }
  0x96   :  { %1523 = vmatpush3.bf16.msra.mxu1 %v1798_v15  ;;  %1572 = vmatpush3.bf16.msra.mxu0 %v1571_v11  ;;  %v1574_v15 = vpack.c.bf16 %v1248_v14, %v1247_v13 }
  0x97   :  { %1524 = vmatprep.subr.bf16.mxu1 %v1799_v16  ;;  %1573 = vmatprep.subr.bf16.mxu0 %v1878_v12  ;;  %v1249_v16 = vld [vmem:[%s2068_s5 + $0x20] sm:$0xff] }
  0x9a   :  { %1525 = vmatpush3.bf16.msra.mxu1 %v1800_v17  ;;  %v1250_v17 = vld [vmem:[%s2068_s5 + $0x28] sm:$0xff]  ;;  %1575 = vmatpush3.bf16.msra.mxu0 %v1574_v15 }
  0x9b   :  { %1526 = vmatprep.subr.bf16.mxu1 %v1801_v18  ;;  %v1880_v18 = vmov 0.0   ;;  %1576 = vmatprep.subr.bf16.mxu0 %v1878_v12 }
  0x9c   :  { %1567 = vmatprep.mubr.msk.f32.mxu0 %vm1879_vm2, %v1880_v18 }
  0x9e   :  { %1527 = vmatpush3.bf16.msra.mxu1 %v1802_v19  ;;  %v1577_v19 = vpack.c.bf16 %v1250_v17, %v1249_v16 }
  0x9f   :  { %1528 = vmatprep.subr.bf16.mxu1 %v1803_v20  ;;  %v1251_v20 = vld [vmem:[%s2068_s5 + $0x30] sm:$0xff] }
  0xa0   :  { %1578 = vmatpush3.bf16.msra.mxu0 %v1577_v19 }
  0xa1   :  { %1579 = vmatprep.subr.bf16.mxu0 %v1878_v12 }
  0xa2   :  { %1529 = vmatpush3.bf16.msra.mxu1 %v1804_v21  ;;  %v1252_v21 = vld [vmem:[%s2068_s5 + $0x38] sm:$0xff] }
  0xa3   :  { %1530 = vmatprep.subr.bf16.mxu1 %v1805_v22  ;;  %v1580_v22 = vpack.c.bf16 %v1252_v21, %v1251_v20 }
  0xa5   :  { %1581 = vmatpush3.bf16.msra.mxu0 %v1580_v22 }
  0xa6   :  { %1531 = vmatpush3.bf16.msra.mxu1 %v1806_v23 }
  0xa7   :  { %1532 = vmatprep.subr.bf16.mxu1 %v1807_v24  ;;  %v1497_v24 = vld [vmem:[%s2067_s4] ss:$0 sm:$0xff]  ;;  %s1849_s4 = scalar_lea.vmem %s1349_s30, 128 }
  0xa8   :  { %p1850_p8 = scmp.ne.s32.totalorder %s1349_s30, %s1849_s4  ;;  %p1855_p10 = scmp.lt.s32.totalorder %s1849_s4, %s1849_s4 }
  0xaa   :  { %1533 = vmatpush3.bf16.msra.mxu1 %v1808_v25  ;;  %p1856_p11 = por %p1855_p10, %p1854_p9 }
  0xab   :  { %1534 = vmatprep.subr.bf16.mxu1 %v1809_v26 }
  0xac   :  { %p1857_p12 = pnand %p1856_p11, %p1850_p8 }
  0xae   :  { %1535 = vmatpush3.bf16.msra.mxu1 %v1810_v27 }
 0x128   :  { %v880_v28 = vpop.f32.mrb[0].mxu1 }
 0x129   :  { %v882_v29 = vpop.f32.mrb[1].mxu1  ;;  %v881_v40 = vadd.f32 %v880_v28, %v176_v37 }
 0x12a   :  { %v884_v30 = vpop.f32.mrb[2].mxu1  ;;  %v883_v42 = vadd.f32 %v882_v29, %v180_v38  ;;  %v1517_v38 = vld [vmem:[%s2069_s6] ss:$0 sm:$0xff] }
 0x12b   :  { %v885_v31 = vpop.f32.mrb[3].mxu1 }
 0x164   :  { %v1003_v39 = vpop.f32.mrb[4].mxu1 }
 0x165   :  { %v1005_v41 = vpop.f32.mrb[5].mxu1 }
 0x166   :  { %v1007_v44 = vpop.f32.mrb[6].mxu1 }
 0x167   :  { %v962_v43 = vpop.f32.mrb[0].mxu0  ;;  %v1008_v47 = vpop.f32.mrb[7].mxu1 }
 0x168   :  { %v1583_v45 = vadd.f32 %v962_v43, %v881_v40  ;;  %v964_v46 = vpop.f32.mrb[1].mxu0 }
 0x169   :  { %v1586_v48 = vadd.f32 %v964_v46, %v883_v42  ;;  %v966_v49 = vpop.f32.mrb[2].mxu0 }
 0x16a   :  { %v1584_v50 = vadd.f32 %v1583_v45, %v1003_v39  ;;  %v967_v51 = vpop.f32.mrb[3].mxu0 }
 0x16b   :  { %v1587_v52 = vadd.f32 %v1586_v48, %v1005_v41 }
 0x16c   :  { %v1493_v53 = vmul.f32 -1.442695, %v1584_v50 }
 0x16d   :  { %v1494_v54 = vmul.f32 -1.442695, %v1587_v52 }
 0x16e   :  { %1811 = vpow2.f32 %v1493_v53 }
 0x16f   :  { %1813 = vpow2.f32 %v1494_v54 }
 0x178   :  { %v1812_v55 = vpop.eup %1811 }
 0x179   :  { %v1814_v56 = vpop.eup %1813  ;;  %v1016_v57 = vadd.f32 1.0, %v1812_v55 }
 0x17a   :  { %v1017_v58 = vadd.f32 1.0, %v1814_v56 }
 0x17b   :  { %1815 = vrcp.f32 %v1016_v57 }
 0x17c   :  { %1817 = vrcp.f32 %v1017_v58 }
 0x185   :  { %v1816_v0 = vpop.eup %1815 }
 0x186   :  { %v1818_v2 = vpop.eup %1817  ;;  %v1035_v3 = vmul.f32 %v1816_v0, %v1028_v61 }
 0x187   :  { %v1036_v4 = vmul.f32 %v1818_v2, %v1032_v62 }
 0x188   :  { %v1050_v5 = vadd.f32 %v1043_v63, %v1035_v3 }
 0x189   :  { %v1051_v6 = vadd.f32 %v1047_v1, %v1036_v4 }
 0x18a   :  { %v1052_v8 = vpack.c.bf16 %v1050_v5, %v1050_v5 }
 0x18b   :  { %v1053_v7 = vpack.c.bf16 %v1051_v6, %v1051_v6 }
 0x18d   :  { %1219 = vmatprep.mubr.bf16.mxu1 %v1053_v7 }
 0x18e   :  { %1220 = vmatmul.mubr.bf16.vlgmr.msra.gmra.mrb[8].mxu1 %v1052_v8 }
 0x261   :  { %v1536_v23 = vpop.f32.mrb[8].mxu1 }
 0x262   :  { %v1537_v25 = vpop.f32.mrb[9].mxu1 }
 0x263   :  { %v1538_v26 = vadd.f32 %v1537_v25, %v1536_v23  ;;  %v1539_v27 = vpop.f32.mrb[10].mxu1 }
 0x264   :  { %v1540_v28 = vpop.f32.mrb[11].mxu1 }
 0x265   :  { %v1222_v29 = vadd.f32 %v1538_v26, %v1497_v24 }
 0x267   :  { %v1514_v30 = vmul.f32 -1.442695, %v1222_v29 }
 0x269   :  { %1819 = vpow2.f32 %v1514_v30 }
 0x273   :  { %v1820_v31 = vpop.eup %1819 }
 0x274   :  { %v1230_v32 = vadd.f32 1.0, %v1820_v31 }
 0x276   :  { %1821 = vrcp.f32 %v1230_v32 }
 0x280   :  { %v1822_v34 = vpop.eup %1821 }
 0x281   :  { %v1238_v36 = vmul.f32 %v1822_v34, %v1515_v33 }
 0x283   :  { %v1244_v37 = vadd.f32 %v1516_v35, %v1238_v36 }
 0x285   :  { %1568 = vmatmul.mubr.msk.f32.vlgmr.msra.gmra.mrb[4].mxu0 %vm1260_vm3, %v1244_v37 }
 0x358   :  { %v1330_v39 = vpop.f32.mrb[4].mxu0 }
 0x359   :  { %v1331_v40 = vadd.f32 %v1517_v38, %v1330_v39  ;;  %v1569_v41 = vpop.f32.mrb[5].mxu0 }
 0x35b   :  { %v1334_v42 = vmax.f32 %v1331_v40, 0.0 }
 0x35d   :  { %v1519_v43 = vmul.f32 -1.442695, %v1334_v42 }
 0x35f   :  { %1823 = vpow2.f32 %v1519_v43 }
 0x369   :  { %v1824_v44 = vpop.eup %1823 }
 0x36a   :  { %v1338_v45 = vadd.f32 1.0, %v1824_v44 }
 0x36c   :  { %1825 = vrcp.f32 %v1338_v45 }
 0x376   :  { %v1826_v46 = vpop.eup %1825 }
 0x377   :  { %1341 = vst [vmem:[#allocation5] sm:$0xff] %v1826_v46 }
 0x378   :  { %1860 = shalt.err (!%p1857_p12)
}
 0x379   :  { %s1861_s9 = scalar_lea.hbm %s2070_s7, 128 }
 0x37a   :  { %p1862_p13 = scmp.ne.s32.totalorder %s2070_s7, %s1861_s9  ;;  %p1865_p0 = scmp.lt.u32.totalorder %s1861_s9, %s2070_s7 }
 0x37c   :  { %p1867_p1 = pnand %p1865_p0, %p1862_p13 }
 0x37e   :  { %1870 = shalt.err (!%p1867_p1)
}
 0x37f   :  { %1351 = dma.vmem_to_hbm [thread:$0]  %s1349_s30, 128, %s2070_s7, [#allocation4]  }
 0x380   :  { %1873 = dma.done.wait [#allocation4], 128  }
 0x381   :  { %1874 = vsyncadd [#allocation4], 4294967168 }
 0x382   :  { %1355 = vsyncpa [#allocation3], 1 }
 0x383   :  { %1356 = vsyncpa [#allocation4], 1 }

</bundles_post_ra>
